<compile_context>
chip_gen: v7x
topology: tpu7x:2x2x1
jax: 0.10.0
libtpu: 0.0.40
codegen_flags: <defaults>
</compile_context>

<pallas_src>
import math

import jax
import jax.numpy as jnp
from jax import lax
from jax.experimental import pallas as pl
from jax.experimental.pallas import tpu as pltpu

BN_EPS = 1e-5          # nn.BatchNorm1d default eps
LN_EPS = 1e-5          # nn.LayerNorm default eps
TM_MAX = 256           # row tile (multiple of 8 sublanes); big enough for HBM roofline
_INV_SQRT2 = 1.0 / math.sqrt(2.0)


def _round_up(x, m):
    return ((x + m - 1) // m) * m


# ---------------------------------------------------------------------------
# Fused kernel: BN-apply + [LayerNorm(bias=False, gamma folded into W)
#                           -> Linear(bias=False) -> exact GELU] * num_layers
# One row tile of the (M, C) slab per grid step; all intermediates stay in
# vregs/VMEM.  Weights are small and resident (same block every grid step).
# ---------------------------------------------------------------------------
def _make_fused_kernel(num_layers):
    def kernel(x_ref, bn_mean_ref, bn_inv_ref, *rest):
        w_refs = rest[:num_layers]
        o_ref = rest[num_layers]

        h = x_ref[...].astype(jnp.float32)

        # BatchNorm1d(affine=False) apply: (x - mean) * inv_std  (per-channel bcast)
        h = (h - bn_mean_ref[...]) * bn_inv_ref[...]

        for li in range(num_layers):
            # LayerNorm over channels (gamma already folded into w_refs[li]).
            mu = jnp.mean(h, axis=-1, keepdims=True)
            var = jnp.mean(jnp.square(h - mu), axis=-1, keepdims=True)
            hn = (h - mu) * lax.rsqrt(var + LN_EPS)

            # Linear(bias=False): hn @ W'   (W' = gamma[:,None] * W, [Cin, Cout])
            y = jnp.dot(hn, w_refs[li][...], preferred_element_type=jnp.float32)

            # exact (erf-based) GELU, matching torch.nn.GELU() default
            h = 0.5 * y * (1.0 + lax.erf(y * _INV_SQRT2))

        o_ref[...] = h.astype(o_ref.dtype)

    return kernel


# ---------------------------------------------------------------------------
# Wrapper reproducing Embed.forward (normalize_input=True path, the default).
# ---------------------------------------------------------------------------
def embed_forward(x, params):
    """x: (N, C, P) float32; params: list of (ln_gamma [1, Cin], W [Cin, Cout]).
    Returns (P, N, dims[-1]) like the PyTorch module."""
    N, C, P = x.shape

    # --- BatchNorm1d training-mode batch statistics (over N and P per channel). ---
    # Trivially memory-bound -> plain XLA reduction; two-pass variance avoids the
    # E[x^2] - E[x]^2 cancellation problem.  NOTE: only the forward normalization
    # is reproduced; the running-stat update (a training side effect) is not modeled.
    xf = x.astype(jnp.float32)
    mean = jnp.mean(xf, axis=(0, 2))                                     # (C,)
    var = jnp.mean(jnp.square(xf - mean[None, :, None]), axis=(0, 2))    # biased var
    bn_mean = mean.reshape(1, C)
    bn_inv = lax.rsqrt(var + BN_EPS).reshape(1, C)

    # --- Fold LN gamma into the linear weights: (xn*gamma) @ W == xn @ (gamma.T*W) ---
    folded_w = [gamma.reshape(-1, 1) * w for gamma, w in params]
    num_layers = len(folded_w)
    cout = folded_w[-1].shape[1]

    # --- permute(2,0,1) -> (P, N, C), flatten rows to (P*N, C), pad to tile mult. ---
    # TODO(synk): the XLA transpose writes one extra copy of x to HBM; folding it into
    # the kernel's index_map needs a permuting BlockSpec, which Pallas does not express.
    xt = jnp.transpose(x, (2, 0, 1)).reshape(P * N, C)
    M = P * N
    tm = TM_MAX if M >= TM_MAX else _round_up(M, 8)
    m_pad = _round_up(M, tm)
    if m_pad != M:
        xt = jnp.pad(xt, ((0, m_pad - M), (0, 0)))   # zero rows are sliced off below

    in_specs = [pl.BlockSpec((tm, C), lambda i: (i, 0)),
                pl.BlockSpec((1, C), lambda i: (0, 0)),
                pl.BlockSpec((1, C), lambda i: (0, 0))]
    for w in folded_w:
        cin_l, cout_l = w.shape
        in_specs.append(pl.BlockSpec((cin_l, cout_l), lambda i: (0, 0)))

    out = pl.pallas_call(
        _make_fused_kernel(num_layers),
        out_shape=jax.ShapeDtypeStruct((m_pad, cout), jnp.float32),
        grid_spec=pltpu.PrefetchScalarGridSpec(
            num_scalar_prefetch=0,
            grid=(m_pad // tm,),
            in_specs=in_specs,
            out_specs=pl.BlockSpec((tm, cout), lambda i: (i, 0))),
        compiler_params=pltpu.CompilerParams(
            dimension_semantics=("parallel",)),
    )(xt, bn_mean, bn_inv, *folded_w)

    return out[:M].reshape(P, N, cout)


# ---------------------------------------------------------------------------
# Pure-JAX reference for correctness checking.
# ---------------------------------------------------------------------------
def embed_reference(x, params):
    mean = jnp.mean(x, axis=(0, 2), keepdims=True)
    var = jnp.mean(jnp.square(x - mean), axis=(0, 2), keepdims=True)
    xb = (x - mean) / jnp.sqrt(var + BN_EPS)
    h = jnp.transpose(xb, (2, 0, 1))
    for gamma, w in params:
        mu = jnp.mean(h, axis=-1, keepdims=True)
        v = jnp.mean(jnp.square(h - mu), axis=-1, keepdims=True)
        hn = (h - mu) / jnp.sqrt(v + LN_EPS) * gamma.reshape(-1)
        y = hn @ w
        h = 0.5 * y * (1.0 + lax.erf(y / jnp.sqrt(2.0)))
    return h


def _make_params(key, c_in, dims):
    # Shapes match the PyTorch module:
    #   LayerNorm(cin, bias=False).weight -> (cin,)      (stored here as (1, cin))
    #   Linear(cin, dout, bias=False).weight -> (dout, cin) (stored transposed (cin, dout))
    params = []
    cin = c_in
    keys = jax.random.split(key, 2 * len(dims))
    for i, dout in enumerate(dims):
        kg, kw = keys[2 * i], keys[2 * i + 1]
        gamma = 1.0 + 0.1 * jax.random.normal(kg, (1, cin), jnp.float32)
        bound = 1.0 / math.sqrt(cin)
        w = jax.random.uniform(kw, (cin, dout), jnp.float32, -bound, bound)
        params.append((gamma, w))
        cin = dout
    return params


if __name__ == "__main__":
    key = jax.random.PRNGKey(0)

    test_cases = [
        # (N, C, P, dims)  — Embed(input_dim=C, dims=dims)
        (4, 32, 16, (64, 128)),   # lane-dense final output, single tile
        (3, 24, 17, (48, 96)),    # exercises row-tail padding (M = 51)
    ]

    for ci, (N, C, P, dims) in enumerate(test_cases):
        kx, kp, key = jax.random.split(key, 3)
        x = jax.random.normal(kx, (N, C, P), jnp.float32)
        params = _make_params(kp, C, dims)

        out = embed_forward(x, params)
        out = jax.block_until_ready(out)

        ref = embed_reference(x, params)
        assert out.shape == (P, N, dims[-1]), (ci, out.shape)
        max_err = float(jnp.max(jnp.abs(out - ref)))
        assert jnp.allclose(out, ref, atol=2e-4, rtol=2e-4), (ci, max_err)

    print("KERNEL_OK")
</pallas_src>

<mosaic_0001>
module attributes {stable_mosaic.version = 11 : i64} {
  func.func @kernel(%arg0: i32, %arg1: memref<64x32xf32, #tpu.memory_space<vmem>>, %arg2: memref<1x32xf32, #tpu.memory_space<vmem>>, %arg3: memref<1x32xf32, #tpu.memory_space<vmem>>, %arg4: memref<32x64xf32, #tpu.memory_space<vmem>>, %arg5: memref<64x128xf32, #tpu.memory_space<vmem>>, %arg6: memref<64x128xf32, #tpu.memory_space<vmem>>) attributes {dimension_semantics = [#tpu.dimension_semantics<parallel>], iteration_bounds = array<i64: 1>, scalar_prefetch = 0 : i64, scratch_operands = 0 : i64, tpu.core_type = #tpu.core_type<tc>, window_params = [{transform_indices = @transform_0, window_bounds = array<i64: 64, 32>}, {pipeline_mode = #tpu.pipeline_mode<synchronous>, transform_indices = @transform_1, window_bounds = array<i64: 1, 32>}, {pipeline_mode = #tpu.pipeline_mode<synchronous>, transform_indices = @transform_2, window_bounds = array<i64: 1, 32>}, {pipeline_mode = #tpu.pipeline_mode<synchronous>, transform_indices = @transform_3, window_bounds = array<i64: 32, 64>}, {pipeline_mode = #tpu.pipeline_mode<synchronous>, transform_indices = @transform_4, window_bounds = array<i64: 64, 128>}, {transform_indices = @transform_5, window_bounds = array<i64: 64, 128>}]} {
    %c0 = arith.constant 0 : index
    %c0_0 = arith.constant 0 : index
    %0 = vector.load %arg1[%c0, %c0_0] : memref<64x32xf32, #tpu.memory_space<vmem>>, vector<64x32xf32>
    %c0_1 = arith.constant 0 : index
    %c0_2 = arith.constant 0 : index
    %1 = vector.load %arg2[%c0_1, %c0_2] : memref<1x32xf32, #tpu.memory_space<vmem>>, vector<1x32xf32>
    %2 = vector.broadcast %1 : vector<1x32xf32> to vector<64x32xf32>
    %3 = arith.subf %0, %2 : vector<64x32xf32>
    %c0_3 = arith.constant 0 : index
    %c0_4 = arith.constant 0 : index
    %4 = vector.load %arg3[%c0_3, %c0_4] : memref<1x32xf32, #tpu.memory_space<vmem>>, vector<1x32xf32>
    %5 = vector.broadcast %4 : vector<1x32xf32> to vector<64x32xf32>
    %6 = arith.mulf %3, %5 : vector<64x32xf32>
    %cst = arith.constant dense<0.000000e+00> : vector<64xf32>
    %7 = vector.multi_reduction <add>, %6, %cst [1] : vector<64x32xf32> to vector<64xf32>
    %8 = vector.shape_cast %7 : vector<64xf32> to vector<64x1xf32>
    %cst_5 = arith.constant 3.200000e+01 : f32
    %9 = vector.broadcast %cst_5 : f32 to vector<64x1xf32>
    %10 = arith.divf %8, %9 : vector<64x1xf32>
    %11 = vector.broadcast %10 : vector<64x1xf32> to vector<64x32xf32>
    %12 = arith.subf %6, %11 : vector<64x32xf32>
    %13 = arith.mulf %12, %12 : vector<64x32xf32>
    %cst_6 = arith.constant dense<0.000000e+00> : vector<64xf32>
    %14 = vector.multi_reduction <add>, %13, %cst_6 [1] : vector<64x32xf32> to vector<64xf32>
    %15 = vector.shape_cast %14 : vector<64xf32> to vector<64x1xf32>
    %cst_7 = arith.constant 3.200000e+01 : f32
    %16 = vector.broadcast %cst_7 : f32 to vector<64x1xf32>
    %17 = arith.divf %15, %16 : vector<64x1xf32>
    %18 = vector.broadcast %10 : vector<64x1xf32> to vector<64x32xf32>
    %19 = arith.subf %6, %18 : vector<64x32xf32>
    %cst_8 = arith.constant 9.99999974E-6 : f32
    %20 = vector.broadcast %cst_8 : f32 to vector<64x1xf32>
    %21 = arith.addf %17, %20 : vector<64x1xf32>
    %22 = math.rsqrt %21 : vector<64x1xf32>
    %23 = vector.broadcast %22 : vector<64x1xf32> to vector<64x32xf32>
    %24 = arith.mulf %19, %23 : vector<64x32xf32>
    %c0_9 = arith.constant 0 : index
    %c0_10 = arith.constant 0 : index
    %25 = vector.load %arg4[%c0_9, %c0_10] : memref<32x64xf32, #tpu.memory_space<vmem>>, vector<32x64xf32>
    %cst_11 = arith.constant dense<0.000000e+00> : vector<64x64xf32>
    %26 = tpu.matmul %24, %25, %cst_11 {dimension_numbers = #tpu.dot_dimension_numbers<[1], [0], [0], [1], [0, 0, 1, 1], [], []>} : vector<64x32xf32>, vector<32x64xf32>, vector<64x64xf32> -> vector<64x64xf32>
    %cst_12 = arith.constant 5.000000e-01 : f32
    %27 = vector.broadcast %cst_12 : f32 to vector<64x64xf32>
    %28 = arith.mulf %27, %26 : vector<64x64xf32>
    %cst_13 = arith.constant 0.707106769 : f32
    %29 = vector.broadcast %cst_13 : f32 to vector<64x64xf32>
    %30 = arith.mulf %26, %29 : vector<64x64xf32>
    %31 = math.erf %30 : vector<64x64xf32>
    %cst_14 = arith.constant 1.000000e+00 : f32
    %32 = vector.broadcast %cst_14 : f32 to vector<64x64xf32>
    %33 = arith.addf %32, %31 : vector<64x64xf32>
    %34 = arith.mulf %28, %33 : vector<64x64xf32>
    %cst_15 = arith.constant dense<0.000000e+00> : vector<64xf32>
    %35 = vector.multi_reduction <add>, %34, %cst_15 [1] : vector<64x64xf32> to vector<64xf32>
    %36 = vector.shape_cast %35 : vector<64xf32> to vector<64x1xf32>
    %cst_16 = arith.constant 6.400000e+01 : f32
    %37 = vector.broadcast %cst_16 : f32 to vector<64x1xf32>
    %38 = arith.divf %36, %37 : vector<64x1xf32>
    %39 = vector.broadcast %38 : vector<64x1xf32> to vector<64x64xf32>
    %40 = arith.subf %34, %39 : vector<64x64xf32>
    %41 = arith.mulf %40, %40 : vector<64x64xf32>
    %cst_17 = arith.constant dense<0.000000e+00> : vector<64xf32>
    %42 = vector.multi_reduction <add>, %41, %cst_17 [1] : vector<64x64xf32> to vector<64xf32>
    %43 = vector.shape_cast %42 : vector<64xf32> to vector<64x1xf32>
    %cst_18 = arith.constant 6.400000e+01 : f32
    %44 = vector.broadcast %cst_18 : f32 to vector<64x1xf32>
    %45 = arith.divf %43, %44 : vector<64x1xf32>
    %46 = vector.broadcast %38 : vector<64x1xf32> to vector<64x64xf32>
    %47 = arith.subf %34, %46 : vector<64x64xf32>
    %cst_19 = arith.constant 9.99999974E-6 : f32
    %48 = vector.broadcast %cst_19 : f32 to vector<64x1xf32>
    %49 = arith.addf %45, %48 : vector<64x1xf32>
    %50 = math.rsqrt %49 : vector<64x1xf32>
    %51 = vector.broadcast %50 : vector<64x1xf32> to vector<64x64xf32>
    %52 = arith.mulf %47, %51 : vector<64x64xf32>
    %c0_20 = arith.constant 0 : index
    %c0_21 = arith.constant 0 : index
    %53 = vector.load %arg5[%c0_20, %c0_21] : memref<64x128xf32, #tpu.memory_space<vmem>>, vector<64x128xf32>
    %cst_22 = arith.constant dense<0.000000e+00> : vector<64x128xf32>
    %54 = tpu.matmul %52, %53, %cst_22 {dimension_numbers = #tpu.dot_dimension_numbers<[1], [0], [0], [1], [0, 0, 1, 1], [], []>} : vector<64x64xf32>, vector<64x128xf32>, vector<64x128xf32> -> vector<64x128xf32>
    %cst_23 = arith.constant 5.000000e-01 : f32
    %55 = vector.broadcast %cst_23 : f32 to vector<64x128xf32>
    %56 = arith.mulf %55, %54 : vector<64x128xf32>
    %cst_24 = arith.constant 0.707106769 : f32
    %57 = vector.broadcast %cst_24 : f32 to vector<64x128xf32>
    %58 = arith.mulf %54, %57 : vector<64x128xf32>
    %59 = math.erf %58 : vector<64x128xf32>
    %cst_25 = arith.constant 1.000000e+00 : f32
    %60 = vector.broadcast %cst_25 : f32 to vector<64x128xf32>
    %61 = arith.addf %60, %59 : vector<64x128xf32>
    %62 = arith.mulf %56, %61 : vector<64x128xf32>
    %c0_26 = arith.constant 0 : index
    %c0_27 = arith.constant 0 : index
    %63 = vector.load %arg6[%c0_26, %c0_27] : memref<64x128xf32, #tpu.memory_space<vmem>>, vector<64x128xf32>
    tpu.vector_store %arg6[%c0_26, %c0_27], %62 {strides = array<i32>} : memref<64x128xf32, #tpu.memory_space<vmem>>, vector<64x128xf32>,
    return
  }
  func.func @transform_0(%arg0: i32) -> (i32, i32) {
    %c0_i32 = arith.constant 0 : i32
    %c0_i32_0 = arith.constant 0 : i32
    return %arg0, %c0_i32 : i32, i32
  }
  func.func @transform_1(%arg0: i32) -> (i32, i32) {
    %c0_i32 = arith.constant 0 : i32
    %c0_i32_0 = arith.constant 0 : i32
    %c0_i32_1 = arith.constant 0 : i32
    return %c0_i32, %c0_i32_0 : i32, i32
  }
  func.func @transform_2(%arg0: i32) -> (i32, i32) {
    %c0_i32 = arith.constant 0 : i32
    %c0_i32_0 = arith.constant 0 : i32
    %c0_i32_1 = arith.constant 0 : i32
    return %c0_i32, %c0_i32_0 : i32, i32
  }
  func.func @transform_3(%arg0: i32) -> (i32, i32) {
    %c0_i32 = arith.constant 0 : i32
    %c0_i32_0 = arith.constant 0 : i32
    %c0_i32_1 = arith.constant 0 : i32
    return %c0_i32, %c0_i32_0 : i32, i32
  }
  func.func @transform_4(%arg0: i32) -> (i32, i32) {
    %c0_i32 = arith.constant 0 : i32
    %c0_i32_0 = arith.constant 0 : i32
    %c0_i32_1 = arith.constant 0 : i32
    return %c0_i32, %c0_i32_0 : i32, i32
  }
  func.func @transform_5(%arg0: i32) -> (i32, i32) {
    %c0_i32 = arith.constant 0 : i32
    %c0_i32_0 = arith.constant 0 : i32
    return %arg0, %c0_i32 : i32, i32
  }
}

</mosaic_0001>

<bundles_post_ra>
// kernel: tpu_custom_call.1
= control target key start
LH: loop header
LB: loop body
LE: loop exit
PB: predicated region body
PF: predicated region fallthrough
CT: control target
= control target key end

     0   :  { %vm59_vm0 = vcmask 261120   ;;  %s1101_s0 = inlined_call_operand.vmem [shape: f32[64,32], index: 0, kind: input, shape index: {}]   ;;  %s1102_s1 = inlined_call_operand.vmem [shape: f32[1,32], index: 1, kind: input, shape index: {}]   ;;  %s1103_s2 = inlined_call_operand.vmem [shape: f32[1,32], index: 2, kind: input, shape index: {}]   ;;  %s1104_s3 = inlined_call_operand.vmem [shape: f32[32,64], index: 3, kind: input, shape index: {}]   ;;  %s1105_s4 = inlined_call_operand.vmem [shape: f32[64,128], index: 4, kind: input, shape index: {}]   ;;  %s1106_s5 = inlined_call_operand.hbm [shape: f32[64,128], index: 5, kind: output, shape index: {}]  }
   0x1   :  { %v21_v0 = vld [vmem:[%s1101_s0] sm:$0xff]  ;;  %v23_v4 = vld [vmem:[%s1101_s0 + $0x10] sm:$0xff]  ;;  %v22_v5 = vld [vmem:[%s1101_s0 + $0x8] sm:$0xff] }
   0x2   :  { %v645_v1 = vld [vmem:[%s1102_s1] ss:$0 sm:$0xff]  ;;  %v24_v6 = vld [vmem:[%s1101_s0 + $0x18] sm:$0xff]  ;;  %v26_v11 = vld [vmem:[%s1101_s0 + $0x28] sm:$0xff] }
   0x3   :  { %v646_v2 = vld [vmem:[%s1103_s2] ss:$0 sm:$0xff]  ;;  %v36_v3 = vsub.f32 %v21_v0, %v645_v1  ;;  %v38_v7 = vsub.f32 %v23_v4, %v645_v1  ;;  %v37_v8 = vsub.f32 %v22_v5, %v645_v1  ;;  %v39_v9 = vsub.f32 %v24_v6, %v645_v1 }
   0x4   :  { %v25_v10 = vld [vmem:[%s1101_s0 + $0x20] sm:$0xff] }
   0x5   :  { %v51_v12 = vmul.f32 %v646_v2, %v36_v3  ;;  %v40_v13 = vsub.f32 %v25_v10, %v645_v1 }
   0x6   :  { %10 = vsyncpa [#allocation3], 0  ;;  %v53_v14 = vmul.f32 %v646_v2, %v38_v7  ;;  %v52_v15 = vmul.f32 %v646_v2, %v37_v8  ;;  %v54_v16 = vmul.f32 %v646_v2, %v39_v9  ;;  %v41_v17 = vsub.f32 %v26_v11, %v645_v1  ;;  %v27_v18 = vld [vmem:[%s1101_s0 + $0x30] sm:$0xff]  ;;  %v28_v20 = vld [vmem:[%s1101_s0 + $0x38] sm:$0xff] }
   0x7   :  { %v60_v19 = vsel %vm59_vm0, %v51_v12, 0.0  ;;  %v55_v23 = vmul.f32 %v646_v2, %v40_v13  ;;  %v42_v24 = vsub.f32 %v27_v18, %v645_v1  ;;  %v43_v27 = vsub.f32 %v28_v20, %v645_v1  ;;  %v165_v10 = vld [vmem:[%s1104_s3] sm:$0xff]  ;;  %v166_v11 = vld [vmem:[%s1104_s3 + $0x8] sm:$0xff]  ;;  %v167_v13 = vld [vmem:[%s1104_s3 + $0x10] sm:$0xff] }
   0x8   :  { %61 = vadd.xlane.f32.xlu0 %v60_v19  ;;  %v66_v21 = vsel %vm59_vm0, %v53_v14, 0.0  ;;  %v63_v22 = vsel %vm59_vm0, %v52_v15, 0.0  ;;  %v69_v25 = vsel %vm59_vm0, %v54_v16, 0.0  ;;  %v56_v26 = vmul.f32 %v646_v2, %v41_v17 }
   0x9   :  { %67 = vadd.xlane.f32.xlu1 %v66_v21  ;;  %v72_v28 = vsel %vm59_vm0, %v55_v23, 0.0  ;;  %v57_v29 = vmul.f32 %v646_v2, %v42_v24  ;;  %v58_v31 = vmul.f32 %v646_v2, %v43_v27  ;;  %vm338_vm1 = vcmask 523264  }
   0xa   :  { %v75_v30 = vsel %vm59_vm0, %v56_v26, 0.0 }
   0xb   :  { %v78_v32 = vsel %vm59_vm0, %v57_v29, 0.0  ;;  %v81_v33 = vsel %vm59_vm0, %v58_v31, 0.0 }
   0xc   :  { %64 = vadd.xlane.f32.xlu0 %v63_v22 }
   0xd   :  { %70 = vadd.xlane.f32.xlu1 %v69_v25 }
  0x10   :  { %73 = vadd.xlane.f32.xlu0 %v72_v28 }
  0x11   :  { %76 = vadd.xlane.f32.xlu1 %v75_v30 }
  0x14   :  { %79 = vadd.xlane.f32.xlu0 %v78_v32 }
  0x15   :  { %82 = vadd.xlane.f32.xlu1 %v81_v33 }
  0x95   :  { %v62_v34 = vpop.xlane.xlu0 %61 }
  0x96   :  { %v85_v35 = vmul.f32 0.03125, %v62_v34  ;;  %v68_v36 = vpop.xlane.xlu1 %67 }
  0x97   :  { %v87_v37 = vmul.f32 0.03125, %v68_v36 }
  0x98   :  { %v933_v38 = vsub.f32 %v51_v12, %v85_v35  ;;  %v739_v12 = vpack.c.bf16 %v166_v11, %v165_v10 }
  0x99   :  { %v935_v39 = vsub.f32 %v53_v14, %v87_v37  ;;  %v65_v40 = vpop.xlane.xlu0 %64  ;;  %v168_v14 = vld [vmem:[%s1104_s3 + $0x18] sm:$0xff] }
  0x9a   :  { %v86_v41 = vmul.f32 0.03125, %v65_v40  ;;  %v71_v42 = vpop.xlane.xlu1 %70  ;;  %v101_v43 = vmul.f32 %v933_v38, %v933_v38  ;;  %740 = vmatprep.subr.bf16.mxu0 %v739_v12 }
  0x9b   :  { %v88_v44 = vmul.f32 0.03125, %v71_v42  ;;  %v103_v45 = vmul.f32 %v935_v39, %v935_v39  ;;  %742 = vmatpush3.bf16.msra.mxu0 %v739_v12 }
  0x9c   :  { %v941_v46 = vsub.f32 %v52_v15, %v86_v41  ;;  %v109_v47 = vsel %vm59_vm0, %v101_v43, 0.0  ;;  %v743_v15 = vpack.c.bf16 %v168_v14, %v167_v13 }
  0x9d   :  { %v944_v48 = vsub.f32 %v54_v16, %v88_v44  ;;  %110 = vadd.xlane.f32.xlu0 %v109_v47  ;;  %v74_v49 = vpop.xlane.xlu0 %73  ;;  %v115_v52 = vsel %vm59_vm0, %v103_v45, 0.0 }
  0x9e   :  { %v89_v50 = vmul.f32 0.03125, %v74_v49  ;;  %v77_v51 = vpop.xlane.xlu1 %76  ;;  %v102_v53 = vmul.f32 %v941_v46, %v941_v46  ;;  %744 = vmatprep.subr.bf16.mxu0 %v743_v15 }
  0x9f   :  { %v90_v54 = vmul.f32 0.03125, %v77_v51  ;;  %v104_v55 = vmul.f32 %v944_v48, %v944_v48  ;;  %746 = vmatpush3.bf16.msra.mxu0 %v743_v15 }
  0xa0   :  { %v951_v56 = vsub.f32 %v55_v23, %v89_v50  ;;  %v112_v57 = vsel %vm59_vm0, %v102_v53, 0.0 }
  0xa1   :  { %v954_v58 = vsub.f32 %v56_v26, %v90_v54  ;;  %116 = vadd.xlane.f32.xlu0 %v115_v52  ;;  %113 = vadd.xlane.f32.xlu1 %v112_v57  ;;  %v80_v59 = vpop.xlane.xlu0 %79  ;;  %v118_v62 = vsel %vm59_vm0, %v104_v55, 0.0 }
  0xa2   :  { %v91_v60 = vmul.f32 0.03125, %v80_v59  ;;  %v83_v61 = vpop.xlane.xlu1 %82  ;;  %v105_v63 = vmul.f32 %v951_v56, %v951_v56 }
  0xa3   :  { %v92_v0 = vmul.f32 0.03125, %v83_v61  ;;  %v106_v1 = vmul.f32 %v954_v58, %v954_v58 }
  0xa4   :  { %v961_v2 = vsub.f32 %v57_v29, %v91_v60  ;;  %v121_v3 = vsel %vm59_vm0, %v105_v63, 0.0 }
  0xa5   :  { %v964_v4 = vsub.f32 %v58_v31, %v92_v0  ;;  %119 = vadd.xlane.f32.xlu1 %v118_v62  ;;  %122 = vadd.xlane.f32.xlu0 %v121_v3  ;;  %v124_v5 = vsel %vm59_vm0, %v106_v1, 0.0 }
  0xa6   :  { %v107_v6 = vmul.f32 %v961_v2, %v961_v2 }
  0xa7   :  { %v108_v7 = vmul.f32 %v964_v4, %v964_v4 }
  0xa8   :  { %v127_v8 = vsel %vm59_vm0, %v107_v6, 0.0 }
  0xa9   :  { %125 = vadd.xlane.f32.xlu1 %v124_v5  ;;  %128 = vadd.xlane.f32.xlu0 %v127_v8  ;;  %v130_v9 = vsel %vm59_vm0, %v108_v7, 0.0 }
  0xad   :  { %131 = vadd.xlane.f32.xlu1 %v130_v9 }
 0x12a   :  { %v111_v16 = vpop.xlane.xlu0 %110 }
 0x12b   :  { %v133_v17 = vmul.f32 0.03125, %v111_v16 }
 0x12d   :  { %v141_v18 = vadd.f32 1e-05, %v133_v17 }
 0x12e   :  { %v114_v19 = vpop.xlane.xlu1 %113  ;;  %v117_v20 = vpop.xlane.xlu0 %116 }
 0x12f   :  { %774 = vrsqrt.f32 %v141_v18  ;;  %v134_v21 = vmul.f32 0.03125, %v114_v19  ;;  %v135_v22 = vmul.f32 0.03125, %v117_v20 }
 0x131   :  { %v142_v23 = vadd.f32 1e-05, %v134_v21  ;;  %v143_v24 = vadd.f32 1e-05, %v135_v22 }
 0x132   :  { %v120_v25 = vpop.xlane.xlu1 %119  ;;  %v123_v26 = vpop.xlane.xlu0 %122 }
 0x133   :  { %776 = vrsqrt.f32 %v142_v23  ;;  %v136_v27 = vmul.f32 0.03125, %v120_v25  ;;  %v137_v28 = vmul.f32 0.03125, %v123_v26 }
 0x134   :  { %778 = vrsqrt.f32 %v143_v24 }
 0x135   :  { %v144_v29 = vadd.f32 1e-05, %v136_v27  ;;  %v145_v30 = vadd.f32 1e-05, %v137_v28 }
 0x136   :  { %v126_v31 = vpop.xlane.xlu1 %125  ;;  %v129_v32 = vpop.xlane.xlu0 %128 }
 0x137   :  { %780 = vrsqrt.f32 %v144_v29  ;;  %v138_v33 = vmul.f32 0.03125, %v126_v31  ;;  %v139_v34 = vmul.f32 0.03125, %v129_v32 }
 0x138   :  { %782 = vrsqrt.f32 %v145_v30 }
 0x139   :  { %v775_v35 = vpop.eup %774  ;;  %v146_v36 = vadd.f32 1e-05, %v138_v33  ;;  %v147_v37 = vadd.f32 1e-05, %v139_v34 }
 0x13a   :  { %v132_v40 = vpop.xlane.xlu1 %131  ;;  %v157_v41 = vmul.f32 %v775_v35, %v933_v38 }
 0x13b   :  { %784 = vrsqrt.f32 %v146_v36  ;;  %v140_v42 = vmul.f32 0.03125, %v132_v40 }
 0x13c   :  { %786 = vrsqrt.f32 %v147_v37  ;;  %699 = vmatprep.mubr.msk.f32.mxu0 %vm59_vm0, %v157_v41 }
 0x13d   :  { %v777_v43 = vpop.eup %776  ;;  %v148_v44 = vadd.f32 1e-05, %v140_v42 }
 0x13e   :  { %v779_v45 = vpop.eup %778  ;;  %v158_v47 = vmul.f32 %v777_v43, %v941_v46 }
 0x13f   :  { %788 = vrsqrt.f32 %v148_v44  ;;  %v159_v49 = vmul.f32 %v779_v45, %v935_v39 }
 0x140   :  { %700 = vmatmul.mubr.msk.f32.vlgmr.msra.gmra.mrb[0].mxu0 %vm59_vm0, %v158_v47 }
 0x141   :  { %v781_v50 = vpop.eup %780  ;;  %702 = vmatprep.mubr.msk.f32.mxu0 %vm59_vm0, %v159_v49 }
 0x142   :  { %v783_v51 = vpop.eup %782  ;;  %v160_v38 = vmul.f32 %v781_v50, %v944_v48 }
 0x143   :  { %v161_v52 = vmul.f32 %v783_v51, %v951_v56 }
 0x144   :  { %703 = vmatmul.mubr.msk.f32.gmra.mrb[2].mxu0 %vm59_vm0, %v160_v38 }
 0x145   :  { %v785_v53 = vpop.eup %784  ;;  %705 = vmatprep.mubr.msk.f32.mxu0 %vm59_vm0, %v161_v52 }
 0x146   :  { %v787_v54 = vpop.eup %786  ;;  %v162_v46 = vmul.f32 %v785_v53, %v954_v58 }
 0x147   :  { %v163_v39 = vmul.f32 %v787_v54, %v961_v2 }
 0x148   :  { %706 = vmatmul.mubr.msk.f32.gmra.mrb[4].mxu0 %vm59_vm0, %v162_v46 }
 0x149   :  { %v789_v55 = vpop.eup %788  ;;  %708 = vmatprep.mubr.msk.f32.mxu0 %vm59_vm0, %v163_v39 }
 0x14a   :  { %v164_v57 = vmul.f32 %v789_v55, %v964_v4 }
 0x14c   :  { %709 = vmatmul.mubr.msk.f32.gmra.mrb[6].mxu0 %vm59_vm0, %v164_v57 }
 0x213   :  { %v701_v48 = vpop.f32.mrb[0].mxu0 }
 0x214   :  { %v259_v56 = vpop.f32.mrb[1].mxu0  ;;  %v307_v0 = vmul.f32 0.70710677, %v701_v48  ;;  %v299_v41 = vmul.f32 0.5, %v701_v48 }
 0x215   :  { %v306_v62 = vmul.f32 0.70710677, %v259_v56  ;;  %v298_v29 = vmul.f32 0.5, %v259_v56 }
 0x217   :  { %v704_v59 = vpop.f32.mrb[2].mxu0 }
 0x218   :  { %v309_v60 = vmul.f32 0.70710677, %v704_v59  ;;  %v269_v61 = vpop.f32.mrb[3].mxu0  ;;  %v301_v10 = vmul.f32 0.5, %v704_v59 }
 0x219   :  { %v308_v63 = vmul.f32 0.70710677, %v269_v61  ;;  %v300_v12 = vmul.f32 0.5, %v269_v61 }
 0x21a   :  { %790 = verf.f32 %v309_v60 }
 0x21b   :  { %792 = verf.f32 %v308_v63  ;;  %v707_v58 = vpop.f32.mrb[4].mxu0 }
 0x21c   :  { %v311_v1 = vmul.f32 0.70710677, %v707_v58  ;;  %v279_v2 = vpop.f32.mrb[5].mxu0  ;;  %794 = verf.f32 %v306_v62  ;;  %v303_v19 = vmul.f32 0.5, %v707_v58 }
 0x21d   :  { %v310_v3 = vmul.f32 0.70710677, %v279_v2  ;;  %v302_v23 = vmul.f32 0.5, %v279_v2 }
 0x21e   :  { %796 = verf.f32 %v311_v1 }
 0x21f   :  { %798 = verf.f32 %v310_v3  ;;  %v710_v4 = vpop.f32.mrb[6].mxu0 }
 0x220   :  { %800 = verf.f32 %v307_v0  ;;  %v313_v5 = vmul.f32 0.70710677, %v710_v4  ;;  %v289_v6 = vpop.f32.mrb[7].mxu0  ;;  %v305_v42 = vmul.f32 0.5, %v710_v4 }
 0x221   :  { %v312_v7 = vmul.f32 0.70710677, %v289_v6  ;;  %v304_v32 = vmul.f32 0.5, %v289_v6 }
 0x222   :  { %802 = verf.f32 %v313_v5 }
 0x223   :  { %804 = verf.f32 %v312_v7 }
 0x224   :  { %v791_v8 = vpop.eup %790 }
 0x225   :  { %v793_v9 = vpop.eup %792  ;;  %v325_v11 = vadd.f32 1.0, %v791_v8 }
 0x226   :  { %v324_v13 = vadd.f32 1.0, %v793_v9  ;;  %v795_v14 = vpop.eup %794 }
 0x227   :  { %v333_v15 = vmul.f32 %v325_v11, %v301_v10  ;;  %v322_v26 = vadd.f32 1.0, %v795_v14 }
 0x228   :  { %v797_v16 = vpop.eup %796  ;;  %v332_v17 = vmul.f32 %v324_v13, %v300_v12 }
 0x229   :  { %v799_v18 = vpop.eup %798  ;;  %v348_v20 = vsel %vm338_vm1, %v333_v15, 0.0  ;;  %v327_v21 = vadd.f32 1.0, %v797_v16  ;;  %v330_v36 = vmul.f32 %v322_v26, %v298_v29 }
 0x22a   :  { %v801_v22 = vpop.eup %800  ;;  %349 = vadd.xlane.f32.xlu1 %v348_v20  ;;  %v345_v24 = vsel %vm338_vm1, %v332_v17, 0.0  ;;  %v326_v25 = vadd.f32 1.0, %v799_v18 }
 0x22b   :  { %346 = vadd.xlane.f32.xlu0 %v345_v24  ;;  %v335_v27 = vmul.f32 %v327_v21, %v303_v19  ;;  %v323_v34 = vadd.f32 1.0, %v801_v22  ;;  %v339_v44 = vsel %vm338_vm1, %v330_v36, 0.0  ;;  %v444_v24 = vld [vmem:[%s1105_s4] sm:$0xff] }
 0x22c   :  { %v803_v28 = vpop.eup %802  ;;  %v334_v30 = vmul.f32 %v326_v25, %v302_v23  ;;  %v445_v25 = vld [vmem:[%s1105_s4 + $0x8] sm:$0xff] }
 0x22d   :  { %v805_v31 = vpop.eup %804  ;;  %v354_v33 = vsel %vm338_vm1, %v335_v27, 0.0  ;;  %v329_v40 = vadd.f32 1.0, %v803_v28  ;;  %v331_v47 = vmul.f32 %v323_v34, %v299_v41  ;;  %v747_v26 = vpack.c.bf16 %v445_v25, %v444_v24  ;;  %v447_v28 = vld [vmem:[%s1105_s4 + $0x18] sm:$0xff] }
 0x22e   :  { %355 = vadd.xlane.f32.xlu1 %v354_v33  ;;  %v351_v35 = vsel %vm338_vm1, %v334_v30, 0.0  ;;  %v328_v37 = vadd.f32 1.0, %v805_v31  ;;  %v449_v31 = vld [vmem:[%s1105_s4 + $0x28] sm:$0xff]  ;;  %v450_v33 = vld [vmem:[%s1105_s4 + $0x30] sm:$0xff]  ;;  %v451_v34 = vld [vmem:[%s1105_s4 + $0x38] sm:$0xff] }
 0x22f   :  { %352 = vadd.xlane.f32.xlu0 %v351_v35  ;;  %v337_v49 = vmul.f32 %v329_v40, %v305_v42  ;;  %v342_v50 = vsel %vm338_vm1, %v331_v47, 0.0  ;;  %763 = vmatprep.subr.bf16.mxu1 %v747_v26  ;;  %v759_v35 = vpack.c.bf16 %v451_v34, %v450_v33 }
 0x230   :  { %v336_v43 = vmul.f32 %v328_v37, %v304_v32  ;;  %748 = vmatprep.subr.bf16.mxu0 %v747_v26  ;;  %767 = vmatpush3.bf16.msra.mxu1 %v747_v26 }
 0x231   :  { %v360_v51 = vsel %vm338_vm1, %v337_v49, 0.0  ;;  %750 = vmatpush3.bf16.msra.mxu0 %v747_v26 }
 0x232   :  { %v357_v45 = vsel %vm338_vm1, %v336_v43, 0.0 }
 0x233   :  { %340 = vadd.xlane.f32.xlu0 %v339_v44  ;;  %358 = vadd.xlane.f32.xlu1 %v357_v45 }
 0x237   :  { %343 = vadd.xlane.f32.xlu0 %v342_v50  ;;  %361 = vadd.xlane.f32.xlu1 %v360_v51 }
 0x2b7   :  { %v350_v38 = vpop.xlane.xlu1 %349 }
 0x2b8   :  { %v367_v52 = vmul.f32 0.015625, %v350_v38  ;;  %v347_v53 = vpop.xlane.xlu0 %346 }
 0x2b9   :  { %v366_v54 = vmul.f32 0.015625, %v347_v53 }
 0x2ba   :  { %v1009_v46 = vsub.f32 %v333_v15, %v367_v52 }
 0x2bb   :  { %v1011_v39 = vsub.f32 %v332_v17, %v366_v54  ;;  %v356_v55 = vpop.xlane.xlu1 %355 }
 0x2bc   :  { %v369_v57 = vmul.f32 0.015625, %v356_v55  ;;  %v353_v48 = vpop.xlane.xlu0 %352  ;;  %v383_v56 = vmul.f32 %v1009_v46, %v1009_v46 }
 0x2bd   :  { %v368_v59 = vmul.f32 0.015625, %v353_v48  ;;  %v382_v60 = vmul.f32 %v1011_v39, %v1011_v39 }
 0x2be   :  { %v1017_v61 = vsub.f32 %v335_v27, %v369_v57  ;;  %v397_v62 = vsel %vm338_vm1, %v383_v56, 0.0  ;;  %v446_v27 = vld [vmem:[%s1105_s4 + $0x10] sm:$0xff] }
 0x2bf   :  { %v1020_v63 = vsub.f32 %v334_v30, %v368_v59  ;;  %398 = vadd.xlane.f32.xlu1 %v397_v62  ;;  %v394_v58 = vsel %vm338_vm1, %v382_v60, 0.0  ;;  %v751_v29 = vpack.c.bf16 %v447_v28, %v446_v27  ;;  %v448_v30 = vld [vmem:[%s1105_s4 + $0x20] sm:$0xff]  ;;  %s862_s4 = smov [#allocation2]  }
 0x2c0   :  { %v359_v0 = vpop.xlane.xlu1 %358  ;;  %395 = vadd.xlane.f32.xlu0 %v394_v58  ;;  %v341_v1 = vpop.xlane.xlu0 %340  ;;  %v385_v2 = vmul.f32 %v1017_v61, %v1017_v61  ;;  %v755_v32 = vpack.c.bf16 %v449_v31, %v448_v30  ;;  %s634_s6 = sshll.u32 %s862_s4, 4  ;;  %s635_s6 = int_to_ptr.vmem [resolvable:$true] %s634_s6 }
 0x2c1   :  { %v370_v3 = vmul.f32 0.015625, %v359_v0  ;;  %v364_v4 = vmul.f32 0.015625, %v341_v1  ;;  %v384_v5 = vmul.f32 %v1020_v63, %v1020_v63  ;;  %764 = vmatprep.subr.bf16.mxu1 %v751_v29  ;;  %752 = vmatprep.subr.bf16.mxu0 %v751_v29  ;;  %s838_s7 = scalar_lea.vmem %s635_s6, 1024  ;;  %p843_p1 = scmp.lt.s32.totalorder %s635_s6, %s635_s6 }
 0x2c2   :  { %v403_v6 = vsel %vm338_vm1, %v385_v2, 0.0  ;;  %768 = vmatpush3.bf16.msra.mxu1 %v751_v29  ;;  %754 = vmatpush3.bf16.msra.mxu0 %v751_v29  ;;  %p839_p0 = scmp.ne.s32.totalorder %s635_s6, %s838_s7  ;;  %p844_p2 = scmp.lt.s32.totalorder %s838_s7, %s838_s7 }
 0x2c3   :  { %v1028_v7 = vsub.f32 %v336_v43, %v370_v3  ;;  %v1030_v8 = vsub.f32 %v330_v36, %v364_v4  ;;  %404 = vadd.xlane.f32.xlu1 %v403_v6  ;;  %v400_v9 = vsel %vm338_vm1, %v384_v5, 0.0  ;;  %765 = vmatprep.subr.bf16.mxu1 %v755_v32 }
 0x2c4   :  { %v362_v10 = vpop.xlane.xlu1 %361  ;;  %401 = vadd.xlane.f32.xlu0 %v400_v9  ;;  %v344_v11 = vpop.xlane.xlu0 %343  ;;  %756 = vmatprep.subr.bf16.mxu0 %v755_v32  ;;  %p845_p3 = por %p844_p2, %p843_p1 }
 0x2c5   :  { %v371_v12 = vmul.f32 0.015625, %v362_v10  ;;  %v365_v13 = vmul.f32 0.015625, %v344_v11  ;;  %v386_v14 = vmul.f32 %v1028_v7, %v1028_v7  ;;  %v380_v15 = vmul.f32 %v1030_v8, %v1030_v8 }
 0x2c6   :  { %769 = vmatpush3.bf16.msra.mxu1 %v755_v32  ;;  %758 = vmatpush3.bf16.msra.mxu0 %v755_v32  ;;  %p846_p4 = pnand %p845_p3, %p839_p0 }
 0x2c7   :  { %v1037_v16 = vsub.f32 %v337_v49, %v371_v12  ;;  %v1039_v17 = vsub.f32 %v331_v47, %v365_v13  ;;  %v406_v18 = vsel %vm338_vm1, %v386_v14, 0.0  ;;  %v388_v19 = vsel %vm338_vm1, %v380_v15, 0.0  ;;  %766 = vmatprep.subr.bf16.mxu1 %v759_v35  ;;  %760 = vmatprep.subr.bf16.mxu0 %v759_v35 }
 0x2c8   :  { %407 = vadd.xlane.f32.xlu1 %v406_v18  ;;  %389 = vadd.xlane.f32.xlu0 %v388_v19 }
 0x2c9   :  { %v387_v20 = vmul.f32 %v1037_v16, %v1037_v16  ;;  %v381_v21 = vmul.f32 %v1039_v17, %v1039_v17 }
 0x2ca   :  { %770 = vmatpush3.bf16.msra.mxu1 %v759_v35  ;;  %762 = vmatpush3.bf16.msra.mxu0 %v759_v35 }
 0x2cb   :  { %v409_v22 = vsel %vm338_vm1, %v387_v20, 0.0  ;;  %v391_v23 = vsel %vm338_vm1, %v381_v21, 0.0 }
 0x2cc   :  { %410 = vadd.xlane.f32.xlu1 %v409_v22  ;;  %392 = vadd.xlane.f32.xlu0 %v391_v23 }
 0x34c   :  { %v399_v36 = vpop.xlane.xlu1 %398 }
 0x34d   :  { %v415_v37 = vmul.f32 0.015625, %v399_v36  ;;  %v396_v40 = vpop.xlane.xlu0 %395 }
 0x34e   :  { %v414_v41 = vmul.f32 0.015625, %v396_v40 }
 0x34f   :  { %v423_v42 = vadd.f32 1e-05, %v415_v37 }
 0x350   :  { %v422_v43 = vadd.f32 1e-05, %v414_v41  ;;  %v405_v44 = vpop.xlane.xlu1 %404 }
 0x351   :  { %806 = vrsqrt.f32 %v423_v42  ;;  %v417_v45 = vmul.f32 0.015625, %v405_v44  ;;  %v402_v47 = vpop.xlane.xlu0 %401 }
 0x352   :  { %808 = vrsqrt.f32 %v422_v43  ;;  %v416_v49 = vmul.f32 0.015625, %v402_v47 }
 0x353   :  { %v425_v50 = vadd.f32 1e-05, %v417_v45 }
 0x354   :  { %v424_v51 = vadd.f32 1e-05, %v416_v49 }
 0x355   :  { %810 = vrsqrt.f32 %v425_v50  ;;  %v408_v38 = vpop.xlane.xlu1 %407  ;;  %v390_v52 = vpop.xlane.xlu0 %389 }
 0x356   :  { %812 = vrsqrt.f32 %v424_v51  ;;  %v418_v53 = vmul.f32 0.015625, %v408_v38  ;;  %v412_v54 = vmul.f32 0.015625, %v390_v52 }
 0x358   :  { %v426_v55 = vadd.f32 1e-05, %v418_v53  ;;  %v420_v57 = vadd.f32 1e-05, %v412_v54 }
 0x359   :  { %v411_v48 = vpop.xlane.xlu1 %410  ;;  %v393_v56 = vpop.xlane.xlu0 %392 }
 0x35a   :  { %814 = vrsqrt.f32 %v426_v55  ;;  %v419_v59 = vmul.f32 0.015625, %v411_v48  ;;  %v413_v60 = vmul.f32 0.015625, %v393_v56 }
 0x35b   :  { %v807_v62 = vpop.eup %806  ;;  %816 = vrsqrt.f32 %v420_v57 }
 0x35c   :  { %v809_v58 = vpop.eup %808  ;;  %v427_v0 = vadd.f32 1e-05, %v419_v59  ;;  %v421_v1 = vadd.f32 1e-05, %v413_v60  ;;  %v439_v3 = vmul.f32 %v807_v62, %v1009_v46 }
 0x35d   :  { %v438_v2 = vmul.f32 %v809_v58, %v1011_v39 }
 0x35e   :  { %818 = vrsqrt.f32 %v427_v0 }
 0x35f   :  { %v811_v4 = vpop.eup %810  ;;  %820 = vrsqrt.f32 %v421_v1  ;;  %730 = vmatprep.mubr.msk.f32.mxu1 %vm338_vm1, %v438_v2 }
 0x360   :  { %v813_v5 = vpop.eup %812  ;;  %731 = vmatmul.mubr.msk.f32.vlgmr.msra.gmra.mrb[0].mxu1 %vm338_vm1, %v439_v3  ;;  %v441_v9 = vmul.f32 %v811_v4, %v1017_v61 }
 0x361   :  { %v440_v6 = vmul.f32 %v813_v5, %v1020_v63 }
 0x363   :  { %733 = vmatprep.mubr.msk.f32.mxu1 %vm338_vm1, %v440_v6 }
 0x364   :  { %v815_v10 = vpop.eup %814  ;;  %734 = vmatmul.mubr.msk.f32.gmra.mrb[2].mxu1 %vm338_vm1, %v441_v9 }
 0x365   :  { %v817_v39 = vpop.eup %816  ;;  %v442_v11 = vmul.f32 %v815_v10, %v1028_v7 }
 0x366   :  { %v436_v46 = vmul.f32 %v817_v39, %v1030_v8 }
 0x367   :  { %736 = vmatprep.mubr.msk.f32.mxu1 %vm338_vm1, %v442_v11 }
 0x368   :  { %v819_v12 = vpop.eup %818  ;;  %727 = vmatprep.mubr.msk.f32.mxu0 %vm338_vm1, %v436_v46 }
 0x369   :  { %v821_v13 = vpop.eup %820  ;;  %v443_v63 = vmul.f32 %v819_v12, %v1037_v16 }
 0x36a   :  { %v437_v61 = vmul.f32 %v821_v13, %v1039_v17 }
 0x36b   :  { %737 = vmatmul.mubr.msk.f32.gmra.mrb[4].mxu1 %vm338_vm1, %v443_v63 }
 0x36c   :  { %728 = vmatmul.mubr.msk.f32.vlgmr.msra.gmra.mrb[8].mxu0 %vm338_vm1, %v437_v61 }
 0x433   :  { %v732_v14 = vpop.f32.mrb[0].mxu1 }
 0x434   :  { %v592_v15 = vmul.f32 0.70710677, %v732_v14  ;;  %v552_v18 = vpop.f32.mrb[1].mxu1  ;;  %v584_v28 = vmul.f32 0.5, %v732_v14 }
 0x435   :  { %v591_v7 = vmul.f32 0.70710677, %v552_v18  ;;  %v583_v31 = vmul.f32 0.5, %v552_v18 }
 0x436   :  { %822 = verf.f32 %v592_v15 }
 0x437   :  { %824 = verf.f32 %v591_v7  ;;  %v735_v8 = vpop.f32.mrb[2].mxu1 }
 0x438   :  { %v594_v19 = vmul.f32 0.70710677, %v735_v8  ;;  %v562_v20 = vpop.f32.mrb[3].mxu1  ;;  %v586_v40 = vmul.f32 0.5, %v735_v8 }
 0x439   :  { %v593_v21 = vmul.f32 0.70710677, %v562_v20  ;;  %v585_v42 = vmul.f32 0.5, %v562_v20 }
 0x43a   :  { %826 = verf.f32 %v594_v19 }
 0x43b   :  { %828 = verf.f32 %v593_v21 }
 0x43e   :  { %v738_v22 = vpop.f32.mrb[4].mxu1 }
 0x43f   :  { %v729_v16 = vpop.f32.mrb[8].mxu0  ;;  %v596_v23 = vmul.f32 0.70710677, %v738_v22  ;;  %v572_v17 = vpop.f32.mrb[5].mxu1  ;;  %v588_v50 = vmul.f32 0.5, %v738_v22 }
 0x440   :  { %v823_v24 = vpop.eup %822  ;;  %v590_v25 = vmul.f32 0.70710677, %v729_v16  ;;  %v542_v26 = vpop.f32.mrb[9].mxu0  ;;  %v595_v33 = vmul.f32 0.70710677, %v572_v17  ;;  %v582_v52 = vmul.f32 0.5, %v729_v16 }
 0x441   :  { %v825_v27 = vpop.eup %824  ;;  %v608_v29 = vadd.f32 1.0, %v823_v24  ;;  %830 = verf.f32 %v596_v23  ;;  %v589_v30 = vmul.f32 0.70710677, %v542_v26  ;;  %v581_v57 = vmul.f32 0.5, %v542_v26 }
 0x442   :  { %v607_v32 = vadd.f32 1.0, %v825_v27  ;;  %832 = verf.f32 %v590_v25  ;;  %v587_v59 = vmul.f32 0.5, %v572_v17 }
 0x443   :  { %v616_v34 = vmul.f32 %v608_v29, %v584_v28  ;;  %834 = verf.f32 %v589_v30 }
 0x444   :  { %v827_v35 = vpop.eup %826  ;;  %v615_v36 = vmul.f32 %v607_v32, %v583_v31  ;;  %836 = verf.f32 %v595_v33 }
 0x445   :  { %v829_v37 = vpop.eup %828  ;;  %624 = vst [vmem:[#allocation2 + $0x18] sm:$0xff] %v616_v34  ;;  %v610_v41 = vadd.f32 1.0, %v827_v35 }
 0x446   :  { %623 = vst [vmem:[#allocation2 + $0x10] sm:$0xff] %v615_v36  ;;  %v609_v43 = vadd.f32 1.0, %v829_v37 }
 0x447   :  { %v618_v44 = vmul.f32 %v610_v41, %v586_v40 }
 0x448   :  { %v617_v45 = vmul.f32 %v609_v43, %v585_v42 }
 0x449   :  { %626 = vst [vmem:[#allocation2 + $0x28] sm:$0xff] %v618_v44 }
 0x44a   :  { %625 = vst [vmem:[#allocation2 + $0x20] sm:$0xff] %v617_v45 }
 0x44b   :  { %v831_v47 = vpop.eup %830 }
 0x44c   :  { %v833_v49 = vpop.eup %832  ;;  %v612_v51 = vadd.f32 1.0, %v831_v47 }
 0x44d   :  { %v835_v38 = vpop.eup %834  ;;  %v606_v53 = vadd.f32 1.0, %v833_v49 }
 0x44e   :  { %v837_v54 = vpop.eup %836  ;;  %v620_v55 = vmul.f32 %v612_v51, %v588_v50  ;;  %v605_v48 = vadd.f32 1.0, %v835_v38 }
 0x44f   :  { %v614_v56 = vmul.f32 %v606_v53, %v582_v52  ;;  %v611_v60 = vadd.f32 1.0, %v837_v54 }
 0x450   :  { %628 = vst [vmem:[#allocation2 + $0x38] sm:$0xff] %v620_v55  ;;  %v613_v62 = vmul.f32 %v605_v48, %v581_v57 }
 0x451   :  { %622 = vst [vmem:[#allocation2 + $0x8] sm:$0xff] %v614_v56  ;;  %v619_v58 = vmul.f32 %v611_v60, %v587_v59 }
 0x452   :  { %621 = vst [vmem:[#allocation2] sm:$0xff] %v613_v62 }
 0x453   :  { %627 = vst [vmem:[#allocation2 + $0x30] sm:$0xff] %v619_v58 }
 0x454   :  { %849 = shalt.err (!%p846_p4)
}
 0x455   :  { %s850_s10 = scalar_lea.hbm %s1106_s5, 1024 }
 0x456   :  { %p851_p5 = scmp.ne.s32.totalorder %s1106_s5, %s850_s10  ;;  %p854_p6 = scmp.lt.u32.totalorder %s850_s10, %s1106_s5 }
 0x458   :  { %p856_p7 = pnand %p854_p6, %p851_p5 }
 0x45a   :  { %859 = shalt.err (!%p856_p7)
}
 0x45b   :  { %s863_s14 = smov 128   ;;  %s864_s15 = smov 8  }
 0x45c   :  { %640 = dma.vmem_to_hbm [thread:$0]  %s635_s6, 1024, %s1106_s5, [#allocation3], %s863_s14, %s863_s14, %s864_s15  }
 0x45d   :  { %860 = dma.done.wait [#allocation3], 1024  }
 0x45e   :  { %861 = vsyncadd [#allocation3], 4294966272 }
 0x45f   :  { %644 = vsyncpa [#allocation3], 1 }

</bundles_post_ra>
